<compile_context>
chip_gen: v5e
topology: v5e:2x2
jax: 0.10.0
libtpu: 0.0.40
codegen_flags: <defaults>
</compile_context>

<pallas_src>
import functools

import jax
import jax.numpy as jnp
from jax import lax
from jax.experimental import pallas as pl
from jax.experimental.pallas import tpu as pltpu


def _self_attn_kernel(x_ref, wq_ref, bq_ref, wk_ref, bk_ref, wv_ref, bv_ref,
                      out_ref, k_scratch, v_scratch, *, tq):
    # x_ref: (C, N) resident for the whole batch element.
    # out_ref: (C, TQ) tile of the output for this (batch, q-tile) grid point.
    qi = pl.program_id(1)

    # ---- K / V projections: once per batch element, kept in VMEM scratch ----
    @pl.when(qi == 0)
    def _():
        x = x_ref[...]                                                     # (C, N)
        k_scratch[...] = (jnp.dot(wk_ref[...], x,
                                  preferred_element_type=jnp.float32)
                          + bk_ref[...])                                   # (C8, N)
        # wv/bv are pre-scaled by gamma / lipschitz_bound in the wrapper.
        v_scratch[...] = (jnp.dot(wv_ref[...], x,
                                  preferred_element_type=jnp.float32)
                          + bv_ref[...])                                   # (C,  N)

    # ---- Query projection for this tile only (wq/bq pre-scaled by 1/norm) ----
    start = pl.multiple_of(qi * tq, tq)
    x_q = x_ref[:, pl.ds(start, tq)]                                       # (C, TQ)
    q = (jnp.dot(wq_ref[...], x_q, preferred_element_type=jnp.float32)
         + bq_ref[...])                                                    # (C8, TQ)

    # energy[m, n] = sum_c q[c, m] * k[c, n]   (already divided by norm_value)
    energy = lax.dot_general(q, k_scratch[...], (((0,), (0,)), ((), ())),
                             preferred_element_type=jnp.float32)           # (TQ, N)

    # ---- numerically-stable row softmax; normalization via EUP reciprocal ----
    m = jnp.max(energy, axis=-1, keepdims=True)
    p = jnp.exp(energy - m)
    inv = pl.reciprocal(jnp.sum(p, axis=-1, keepdims=True), approx=True)   # (TQ, 1)
    p = p * inv                                                            # (TQ, N)

    # out[c, m] = sum_n v[c, n] * attn[m, n]
    out_attn = lax.dot_general(v_scratch[...], p, (((1,), (1,)), ((), ())),
                               preferred_element_type=jnp.float32)         # (C, TQ)

    # gamma / bound already folded into v_scratch -> epilogue is just the residual.
    out_ref[...] = out_attn + x_q


def self_attn_forward(x, wq, bq, wk, bk, wv, bv, gamma, lip=True, tq=None):
    """x: (B, C, W, H) float32. 1x1-conv weights given as 2-D (out_ch, in_ch)."""
    B, C, W, H = x.shape
    N = W * H
    C8 = wq.shape[0]
    f32 = jnp.float32

    # Query tile: lane-dense multiple of 128 that divides N, else full N.
    if tq is None:
        tq = next((t for t in (512, 256, 128) if N % t == 0), N)
    assert N % tq == 0, f"N={N} must be divisible by tq={tq}"
    n_qt = N // tq

    x_flat = x.reshape(B, C, N).astype(f32)

    # --- Lipschitz scalars (matches Self_Attn.lipschitz_norm / lipschitz_bound),
    #     folded into the weights so the kernel has no scalar divides ---
    if lip:
        u = jnp.sqrt(jnp.sum(wq.astype(f32) ** 2))                 # ||Q||_F
        v_ = jnp.max(jnp.sqrt(jnp.sum(wk.astype(f32) ** 2, axis=0)))  # max_c ||K[:,c]||
        w_ = jnp.max(jnp.sqrt(jnp.sum(wv.astype(f32) ** 2, axis=0)))  # max_c ||V[:,c]||
        norm_value = jnp.maximum(jnp.maximum(u * v_, v_ * u), u * w_)
        bound = (jnp.exp(jnp.sqrt(f32(3.0))) * jnp.sqrt(f32(N / C))
                 + 2.0 * jnp.sqrt(f32(6.0)))
    else:
        norm_value = f32(1.0)
        bound = f32(1.0)
    g = jnp.asarray(gamma, f32).reshape(())
    out_scale = g / bound

    wq_s = wq.astype(f32) / norm_value
    bq_s = (bq.astype(f32) / norm_value).reshape(C8, 1)
    wk_s = wk.astype(f32)
    bk_s = bk.astype(f32).reshape(C8, 1)
    wv_s = wv.astype(f32) * out_scale
    bv_s = (bv.astype(f32) * out_scale).reshape(C, 1)

    # Explicit VMEM budget with headroom (re-derived per shape; capped for v7x).
    est_bytes = 4 * (2 * C * N              # x block (double-buffered)
                     + 2 * C * tq           # out block (double-buffered)
                     + (C8 + C) * N         # resident K/V scratch
                     + 4 * tq * N           # energy / p intermediates + slack
                     + 2 * (2 * C8 * C + C * C + 2 * C8 + C))   # weights/biases
    vmem_limit = int(min(max(2 * est_bytes, 16 * 1024 * 1024), 64 * 1024 * 1024))

    out_flat = pl.pallas_call(
        functools.partial(_self_attn_kernel, tq=tq),
        out_shape=jax.ShapeDtypeStruct((B, C, N), f32),
        grid=(B, n_qt),
        in_specs=[
            pl.BlockSpec((None, C, N), lambda b, qi: (b, 0, 0)),   # x (per batch, resident)
            pl.BlockSpec((C8, C), lambda b, qi: (0, 0)),           # Wq (pre-scaled 1/norm)
            pl.BlockSpec((C8, 1), lambda b, qi: (0, 0)),           # bq (pre-scaled 1/norm)
            pl.BlockSpec((C8, C), lambda b, qi: (0, 0)),           # Wk
            pl.BlockSpec((C8, 1), lambda b, qi: (0, 0)),           # bk
            pl.BlockSpec((C, C), lambda b, qi: (0, 0)),            # Wv (pre-scaled gamma/bound)
            pl.BlockSpec((C, 1), lambda b, qi: (0, 0)),            # bv (pre-scaled gamma/bound)
        ],
        out_specs=pl.BlockSpec((None, C, tq), lambda b, qi: (b, 0, qi)),
        scratch_shapes=[pltpu.VMEM((C8, N), f32),                  # K resident per batch
                        pltpu.VMEM((C, N), f32)],                  # V resident per batch
        compiler_params=pltpu.CompilerParams(
            dimension_semantics=("parallel", "arbitrary"),
            vmem_limit_bytes=vmem_limit),
    )(x_flat, wq_s, bq_s, wk_s, bk_s, wv_s, bv_s)

    return out_flat.reshape(B, C, W, H)


def self_attn_reference(x, wq, bq, wk, bk, wv, bv, gamma, lip=True):
    """Pure-JAX reference mirroring the PyTorch forward exactly."""
    B, C, W, H = x.shape
    N = W * H
    xf = x.reshape(B, C, N)
    q = jnp.einsum('oc,bcn->bon', wq, xf) + bq[None, :, None]
    k = jnp.einsum('oc,bcn->bon', wk, xf) + bk[None, :, None]
    v = jnp.einsum('oc,bcn->bon', wv, xf) + bv[None, :, None]
    energy = jnp.einsum('bcm,bcn->bmn', q, k)
    if lip:
        u = jnp.sqrt(jnp.sum(wq * wq))
        v_ = jnp.max(jnp.sqrt(jnp.sum(wk * wk, axis=0)))
        w_ = jnp.max(jnp.sqrt(jnp.sum(wv * wv, axis=0)))
        norm_value = jnp.maximum(jnp.maximum(u * v_, v_ * u), u * w_)
        energy = energy / norm_value
    attn = jax.nn.softmax(energy, axis=-1)
    out = jnp.einsum('bcn,bmn->bcm', v, attn).reshape(B, C, W, H)
    if lip:
        bound = (jnp.exp(jnp.sqrt(jnp.float32(3.0))) * jnp.sqrt(jnp.float32(N / C))
                 + 2.0 * jnp.sqrt(jnp.float32(6.0)))
        out = out / bound
    return jnp.asarray(gamma).reshape(()) * out + x


if __name__ == "__main__":
    key = jax.random.PRNGKey(0)
    B, C, W, H = 2, 16, 16, 16          # in_dim = 16  ->  C//8 = 2, N = 256
    C8 = C // 8
    ks = jax.random.split(key, 8)

    lim = 1.0 / (C ** 0.5)              # PyTorch Conv2d-style uniform init range
    wq = jax.random.uniform(ks[0], (C8, C), jnp.float32, -lim, lim)
    bq = jax.random.uniform(ks[1], (C8,), jnp.float32, -lim, lim)
    wk = jax.random.uniform(ks[2], (C8, C), jnp.float32, -lim, lim)
    bk = jax.random.uniform(ks[3], (C8,), jnp.float32, -lim, lim)
    wv = jax.random.uniform(ks[4], (C, C), jnp.float32, -lim, lim)
    bv = jax.random.uniform(ks[5], (C,), jnp.float32, -lim, lim)
    # NOTE: nn.Parameter(torch.zeros(1)) in __init__; use a nonzero deterministic
    # value so the attention path actually contributes to the checked output.
    gamma = jnp.array([0.25], jnp.float32)
    x = jax.random.normal(ks[6], (B, C, W, H), jnp.float32)

    # tq=128 so the demo exercises multiple query tiles (N=256 -> 2 tiles).
    out = self_attn_forward(x, wq, bq, wk, bk, wv, bv, gamma, lip=True, tq=128)
    out = jax.block_until_ready(out)

    ref = self_attn_reference(x, wq, bq, wk, bk, wv, bv, gamma, lip=True)
    assert out.shape == x.shape
    err = float(jnp.max(jnp.abs(out - ref)))
    assert err < 2e-4, f"max abs err vs reference: {err}"
    print("KERNEL_OK")
</pallas_src>

<mosaic_0001>
module attributes {stable_mosaic.version = 11 : i64} {
  func.func @_self_attn_kernel(%arg0: i32, %arg1: i32, %arg2: memref<1x16x256xf32, #tpu.memory_space<vmem>>, %arg3: memref<2x16xf32, #tpu.memory_space<vmem>>, %arg4: memref<2x1xf32, #tpu.memory_space<vmem>>, %arg5: memref<2x16xf32, #tpu.memory_space<vmem>>, %arg6: memref<2x1xf32, #tpu.memory_space<vmem>>, %arg7: memref<16x16xf32, #tpu.memory_space<vmem>>, %arg8: memref<16x1xf32, #tpu.memory_space<vmem>>, %arg9: memref<1x16x128xf32, #tpu.memory_space<vmem>>, %arg10: memref<2x256xf32, #tpu.memory_space<vmem>>, %arg11: memref<16x256xf32, #tpu.memory_space<vmem>>) attributes {dimension_semantics = [#tpu.dimension_semantics<parallel>, #tpu.dimension_semantics<arbitrary>], iteration_bounds = array<i64: 2, 2>, scalar_prefetch = 0 : i64, scratch_operands = 2 : i64, tpu.core_type = #tpu.core_type<tc>, window_params = [{transform_indices = @transform_0, window_bounds = array<i64: 1, 16, 256>}, {pipeline_mode = #tpu.pipeline_mode<synchronous>, transform_indices = @transform_1, window_bounds = array<i64: 2, 16>}, {pipeline_mode = #tpu.pipeline_mode<synchronous>, transform_indices = @transform_2, window_bounds = array<i64: 2, 1>}, {pipeline_mode = #tpu.pipeline_mode<synchronous>, transform_indices = @transform_3, window_bounds = array<i64: 2, 16>}, {pipeline_mode = #tpu.pipeline_mode<synchronous>, transform_indices = @transform_4, window_bounds = array<i64: 2, 1>}, {pipeline_mode = #tpu.pipeline_mode<synchronous>, transform_indices = @transform_5, window_bounds = array<i64: 16, 16>}, {pipeline_mode = #tpu.pipeline_mode<synchronous>, transform_indices = @transform_6, window_bounds = array<i64: 16, 1>}, {transform_indices = @transform_7, window_bounds = array<i64: 1, 16, 128>}]} {
    %c0_i32 = arith.constant 0 : i32
    %0 = arith.cmpi eq, %arg1, %c0_i32 : i32
    %1 = arith.extui %0 : i1 to i32
    %c0_i32_0 = arith.constant 0 : i32
    %2 = arith.cmpi ne, %1, %c0_i32_0 : i32
    scf.if %2 {
      %c0_17 = arith.constant 0 : index
      %c0_18 = arith.constant 0 : index
      %c0_19 = arith.constant 0 : index
      %31 = vector.load %arg2[%c0_17, %c0_18, %c0_19] : memref<1x16x256xf32, #tpu.memory_space<vmem>>, vector<1x16x256xf32>
      %32 = vector.shape_cast %31 : vector<1x16x256xf32> to vector<16x256xf32>
      %c0_20 = arith.constant 0 : index
      %c0_21 = arith.constant 0 : index
      %33 = vector.load %arg5[%c0_20, %c0_21] : memref<2x16xf32, #tpu.memory_space<vmem>>, vector<2x16xf32>
      %cst_22 = arith.constant dense<0.000000e+00> : vector<2x256xf32>
      %34 = tpu.matmul %33, %32, %cst_22 {dimension_numbers = #tpu.dot_dimension_numbers<[1], [0], [0], [1], [0, 0, 1, 1], [], []>} : vector<2x16xf32>, vector<16x256xf32>, vector<2x256xf32> -> vector<2x256xf32>
      %c0_23 = arith.constant 0 : index
      %c0_24 = arith.constant 0 : index
      %35 = vector.load %arg6[%c0_23, %c0_24] : memref<2x1xf32, #tpu.memory_space<vmem>>, vector<2x1xf32>
      %36 = vector.broadcast %35 : vector<2x1xf32> to vector<2x256xf32>
      %37 = arith.addf %34, %36 : vector<2x256xf32>
      %c0_25 = arith.constant 0 : index
      %c0_26 = arith.constant 0 : index
      %38 = vector.load %arg10[%c0_25, %c0_26] : memref<2x256xf32, #tpu.memory_space<vmem>>, vector<2x256xf32>
      tpu.vector_store %arg10[%c0_25, %c0_26], %37 {strides = array<i32>} : memref<2x256xf32, #tpu.memory_space<vmem>>, vector<2x256xf32>,
      %c0_27 = arith.constant 0 : index
      %c0_28 = arith.constant 0 : index
      %39 = vector.load %arg7[%c0_27, %c0_28] : memref<16x16xf32, #tpu.memory_space<vmem>>, vector<16x16xf32>
      %cst_29 = arith.constant dense<0.000000e+00> : vector<16x256xf32>
      %40 = tpu.matmul %39, %32, %cst_29 {dimension_numbers = #tpu.dot_dimension_numbers<[1], [0], [0], [1], [0, 0, 1, 1], [], []>} : vector<16x16xf32>, vector<16x256xf32>, vector<16x256xf32> -> vector<16x256xf32>
      %c0_30 = arith.constant 0 : index
      %c0_31 = arith.constant 0 : index
      %41 = vector.load %arg8[%c0_30, %c0_31] : memref<16x1xf32, #tpu.memory_space<vmem>>, vector<16x1xf32>
      %42 = vector.broadcast %41 : vector<16x1xf32> to vector<16x256xf32>
      %43 = arith.addf %40, %42 : vector<16x256xf32>
      %c0_32 = arith.constant 0 : index
      %c0_33 = arith.constant 0 : index
      %44 = vector.load %arg11[%c0_32, %c0_33] : memref<16x256xf32, #tpu.memory_space<vmem>>, vector<16x256xf32>
      tpu.vector_store %arg11[%c0_32, %c0_33], %43 {strides = array<i32>} : memref<16x256xf32, #tpu.memory_space<vmem>>, vector<16x256xf32>,
    } else {
    }
    %c128_i32 = arith.constant 128 : i32
    %3 = arith.muli %arg1, %c128_i32 : i32
    %4 = tpu.assume_multiple %3, 128 : i32
    %c0 = arith.constant 0 : index
    %c0_1 = arith.constant 0 : index
    %5 = arith.index_cast %4 : i32 to index
    %6 = vector.load %arg2[%c0, %c0_1, %5] : memref<1x16x256xf32, #tpu.memory_space<vmem>>, vector<1x16x128xf32>
    %7 = vector.shape_cast %6 : vector<1x16x128xf32> to vector<16x128xf32>
    %c0_2 = arith.constant 0 : index
    %c0_3 = arith.constant 0 : index
    %8 = vector.load %arg3[%c0_2, %c0_3] : memref<2x16xf32, #tpu.memory_space<vmem>>, vector<2x16xf32>
    %cst = arith.constant dense<0.000000e+00> : vector<2x128xf32>
    %9 = tpu.matmul %8, %7, %cst {dimension_numbers = #tpu.dot_dimension_numbers<[1], [0], [0], [1], [0, 0, 1, 1], [], []>} : vector<2x16xf32>, vector<16x128xf32>, vector<2x128xf32> -> vector<2x128xf32>
    %c0_4 = arith.constant 0 : index
    %c0_5 = arith.constant 0 : index
    %10 = vector.load %arg4[%c0_4, %c0_5] : memref<2x1xf32, #tpu.memory_space<vmem>>, vector<2x1xf32>
    %11 = vector.broadcast %10 : vector<2x1xf32> to vector<2x128xf32>
    %12 = arith.addf %9, %11 : vector<2x128xf32>
    %c0_6 = arith.constant 0 : index
    %c0_7 = arith.constant 0 : index
    %13 = vector.load %arg10[%c0_6, %c0_7] : memref<2x256xf32, #tpu.memory_space<vmem>>, vector<2x256xf32>
    %cst_8 = arith.constant dense<0.000000e+00> : vector<128x256xf32>
    %14 = tpu.matmul %12, %13, %cst_8 {dimension_numbers = #tpu.dot_dimension_numbers<[0], [0], [1], [1], [0, 1, 1, 1], [], []>} : vector<2x128xf32>, vector<2x256xf32>, vector<128x256xf32> -> vector<128x256xf32>
    %cst_9 = arith.constant dense<0xFF800000> : vector<128xf32>
    %15 = vector.multi_reduction <maximumf>, %14, %cst_9 [1] : vector<128x256xf32> to vector<128xf32>
    %16 = vector.shape_cast %15 : vector<128xf32> to vector<128x1xf32>
    %17 = vector.broadcast %16 : vector<128x1xf32> to vector<128x256xf32>
    %18 = arith.subf %14, %17 : vector<128x256xf32>
    %19 = math.exp %18 : vector<128x256xf32>
    %cst_10 = arith.constant dense<0.000000e+00> : vector<128xf32>
    %20 = vector.multi_reduction <add>, %19, %cst_10 [1] : vector<128x256xf32> to vector<128xf32>
    %21 = vector.shape_cast %20 : vector<128xf32> to vector<128x1xf32>
    %22 = tpu.reciprocal %21 {approx = true} : vector<128x1xf32> -> vector<128x1xf32>
    %23 = vector.broadcast %22 : vector<128x1xf32> to vector<128x256xf32>
    %24 = arith.mulf %19, %23 : vector<128x256xf32>
    %c0_11 = arith.constant 0 : index
    %c0_12 = arith.constant 0 : index
    %25 = vector.load %arg11[%c0_11, %c0_12] : memref<16x256xf32, #tpu.memory_space<vmem>>, vector<16x256xf32>
    %cst_13 = arith.constant dense<0.000000e+00> : vector<16x128xf32>
    %26 = tpu.matmul %25, %24, %cst_13 {dimension_numbers = #tpu.dot_dimension_numbers<[1], [1], [0], [0], [0, 0, 1, 0], [], []>} : vector<16x256xf32>, vector<128x256xf32>, vector<16x128xf32> -> vector<16x128xf32>
    %27 = arith.addf %26, %7 : vector<16x128xf32>
    %c0_14 = arith.constant 0 : index
    %c0_15 = arith.constant 0 : index
    %c0_16 = arith.constant 0 : index
    %28 = vector.load %arg9[%c0_14, %c0_15, %c0_16] : memref<1x16x128xf32, #tpu.memory_space<vmem>>, vector<1x16x128xf32>
    %29 = vector.shape_cast %28 : vector<1x16x128xf32> to vector<16x128xf32>
    %30 = vector.shape_cast %27 : vector<16x128xf32> to vector<1x16x128xf32>
    tpu.vector_store %arg9[%c0_14, %c0_15, %c0_16], %30 {strides = array<i32>} : memref<1x16x128xf32, #tpu.memory_space<vmem>>, vector<1x16x128xf32>,
    return
  }
  func.func @transform_0(%arg0: i32, %arg1: i32) -> (i32, i32, i32) {
    %c0_i32 = arith.constant 0 : i32
    %c0_i32_0 = arith.constant 0 : i32
    %c0_i32_1 = arith.constant 0 : i32
    return %arg0, %c0_i32, %c0_i32_0 : i32, i32, i32
  }
  func.func @transform_1(%arg0: i32, %arg1: i32) -> (i32, i32) {
    %c0_i32 = arith.constant 0 : i32
    %c0_i32_0 = arith.constant 0 : i32
    %c0_i32_1 = arith.constant 0 : i32
    return %c0_i32, %c0_i32_0 : i32, i32
  }
  func.func @transform_2(%arg0: i32, %arg1: i32) -> (i32, i32) {
    %c0_i32 = arith.constant 0 : i32
    %c0_i32_0 = arith.constant 0 : i32
    %c0_i32_1 = arith.constant 0 : i32
    return %c0_i32, %c0_i32_0 : i32, i32
  }
  func.func @transform_3(%arg0: i32, %arg1: i32) -> (i32, i32) {
    %c0_i32 = arith.constant 0 : i32
    %c0_i32_0 = arith.constant 0 : i32
    %c0_i32_1 = arith.constant 0 : i32
    return %c0_i32, %c0_i32_0 : i32, i32
  }
  func.func @transform_4(%arg0: i32, %arg1: i32) -> (i32, i32) {
    %c0_i32 = arith.constant 0 : i32
    %c0_i32_0 = arith.constant 0 : i32
    %c0_i32_1 = arith.constant 0 : i32
    return %c0_i32, %c0_i32_0 : i32, i32
  }
  func.func @transform_5(%arg0: i32, %arg1: i32) -> (i32, i32) {
    %c0_i32 = arith.constant 0 : i32
    %c0_i32_0 = arith.constant 0 : i32
    %c0_i32_1 = arith.constant 0 : i32
    return %c0_i32, %c0_i32_0 : i32, i32
  }
  func.func @transform_6(%arg0: i32, %arg1: i32) -> (i32, i32) {
    %c0_i32 = arith.constant 0 : i32
    %c0_i32_0 = arith.constant 0 : i32
    %c0_i32_1 = arith.constant 0 : i32
    return %c0_i32, %c0_i32_0 : i32, i32
  }
  func.func @transform_7(%arg0: i32, %arg1: i32) -> (i32, i32, i32) {
    %c0_i32 = arith.constant 0 : i32
    %c0_i32_0 = arith.constant 0 : i32
    return %arg0, %c0_i32, %arg1 : i32, i32, i32
  }
}

</mosaic_0001>

<bundles_post_ra>
// kernel: tpu_custom_call.1
= control target key start
LH: loop header
LB: loop body
LE: loop exit
PB: predicated region body
PF: predicated region fallthrough
CT: control target
= control target key end

     0   :  { %s2065_s0 = inlined_call_operand.hbm [shape: f32[2,16,256], index: 0, kind: input, shape index: {}]   ;;  %s2066_s1 = inlined_call_operand.vmem [shape: f32[2,16], index: 1, kind: input, shape index: {}]   ;;  %s2067_s2 = inlined_call_operand.vmem [shape: f32[2,1], index: 2, kind: input, shape index: {}]   ;;  %s2068_s3 = inlined_call_operand.vmem [shape: f32[2,16], index: 3, kind: input, shape index: {}]   ;;  %s2069_s4 = inlined_call_operand.vmem [shape: f32[2,1], index: 4, kind: input, shape index: {}]   ;;  %s2070_s5 = inlined_call_operand.vmem [shape: f32[16,16], index: 5, kind: input, shape index: {}]   ;;  %s2071_s6 = inlined_call_operand.vmem [shape: f32[16,1], index: 6, kind: input, shape index: {}]   ;;  %s2072_s7 = inlined_call_operand.hbm [shape: f32[2,16,256], index: 7, kind: output, shape index: {}]  }
   0x1   :  { %2080 = sst [smem:[#allocation17_spill]] %s2072_s7 }
   0x2   :  { %12 = vsyncpa [#allocation5], 0 }
   0x3   :  { %14 = vsyncpa [#allocation5 + $0x1], 0 }
   0x4   :  { %15 = vsyncpa [#allocation6], 0 }
   0x5   :  { %17 = vsyncpa [#allocation6 + $0x1], 0  ;;  %s1575_s24 = smov 0   ;;  %s1577_s25 = smov 0  }
   0x6   :  { %s1579_s26 = smov 0   ;;  %s1581_s27 = smov 0  }
   0x7   :  { %s1583_s28 = smov 0   ;;  %s1585_s29 = smov 0  }
   0x8   :  { %s1587_s30 = smov 0   ;;  %s1589_s8 = smov 0  }
   0x9   :  { %s1591_s9 = smov 0   ;;  %s1593_s10 = smov 0  }
   0xa   :  { %s1595_s11 = smov 0  }
   0xb LB: > { %2081 = sst [smem:[#allocation10_spill]] %s1518_s9  ;;  %s1105_s12 = sadd.s32 4294967295, %s1526_s11   ;;  %s1526_s11 = sphi %s1595_s11, %s23_s11   ;;  %s1522_s10 = sphi %s1593_s10, %s2100_s10   ;;  %s1518_s9 = sphi %s1591_s9, %s2099_s9   ;;  %s1514_s8 = sphi %s1589_s8, %s2107_s8   ;;  %s1510_s30 = sphi %s1587_s30, %s2097_s30   ;;  %s1506_s29 = sphi %s1585_s29, %s2106_s29   ;;  %s1502_s28 = sphi %s1583_s28, %s2105_s28   ;;  %s1498_s27 = sphi %s1581_s27, %s2104_s27   ;;  %s1494_s26 = sphi %s1579_s26, %s2103_s26   ;;  %s1490_s25 = sphi %s1577_s25, %s2102_s25   ;;  %s1486_s24 = sphi %s1575_s24, %s2101_s24  }
   0xc   : > { %2082 = sst [smem:[#allocation11_spill]] %s1522_s10  ;;  %s1106_s13 = sadd.s32 4294967294, %s1526_s11  }
   0xd   : > { %s32_s14 = sadd.s32 1, %s1518_s9  ;;  %s35_s15 = sadd.s32 1, %s1522_s10 }
   0xe   : > { %p33_p0 = scmp.ge.s32.totalorder %s32_s14, 2  ;;  %s42_s16 = sadd.s32 1, %s1506_s29 }
   0xf   : > { %p49_p1 = scmp.ne.s32.totalorder %s1506_s29, %s1502_s28  ;;  %p50_p2 = scmp.eq.s32.totalorder %s1526_s11, 0 }
  0x10   : > { %s2109_s14 = smov (%p33_p0, %s32_s14), 0  ;;  %s2111_s15 = smov (!%p33_p0, %s35_s15), %s1522_s10 }
  0x11   : > { %2083 = sst [smem:[#allocation12_spill]] %s2109_s14  ;;  %p1639_p3 = por %p50_p2, %p49_p1 }
  0x12   : > { %p55_p4 = scmp.ne.s32.totalorder %s1502_s28, %s1498_s27  ;;  %p37_p5 = scmp.ge.s32.totalorder %s2111_s15, 2 }
  0x13   : > { %p56_p6 = scmp.eq.s32.totalorder %s1105_s12, 0  ;;  %s192_s18 = ssub.s32 %s1518_s9, %s2109_s14 }
  0x14   : > { %s196_s19 = sadd.s32 1, %s1494_s26  ;;  %s2113_s15 = smov (%p37_p5, %s2111_s15), 0 }
  0x15   : > { %2085 = sst [smem:[#allocation13_spill]] %s2113_s15  ;;  %p1649_p7 = por %p56_p6, %p55_p4 }
  0x16   : > { %p206_p8 = scmp.ne.s32.totalorder %s1494_s26, %s1490_s25  ;;  %s39_s21 = ssub.s32 %s1522_s10, %s2113_s15 }
  0x17   : > { %p207_p9 = scmp.eq.s32.totalorder %s1105_s12, 3  ;;  %p40_p10 = scmp.eq.s32.totalorder %s39_s21, 0 }
  0x18   : > { %s193_s22 = sor.u32 %s192_s18, %s39_s21  ;;  %p212_p13 = scmp.ne.s32.totalorder %s1490_s25, %s1486_s24 }
  0x19   : > { %p194_p11 = scmp.eq.s32.totalorder %s193_s22, 0  ;;  %p1657_p12 = por %p207_p9, %p206_p8 }
  0x1a   : > { %s1662_s27 = scalar_select %p40_p10, %s1506_s29, %s42_s16  }
  0x1b   : > { %s2087_s23 = scalar_select %p1657_p12, 1, 0 }
  0x1c   : > { %2089 = sst [smem:[#allocation15_spill]] %s1662_s27  ;;  %p213_p0 = scmp.eq.s32.totalorder %s1106_s13, 3 }
  0x1d   : > { %2088 = sst [smem:[#allocation14_spill]] %s2087_s23  ;;  %p1177_p1 = scmp.lt.s32.totalorder %s1526_s11, 4 }
  0x1e   : > { %s1665_s14 = scalar_select %p194_p11, %s1494_s26, %s196_s19  }
  0x1f   : > { %p1670_p2 = por %p213_p0, %p212_p13  ;;  %s251_s12 = sand.u32 1, %s1506_s29  }
  0x20   : > { %2090 = sst [smem:[#allocation16_spill]] %s1665_s14  ;;  %s1109_s18 = sshll.u32 %s251_s12, 5 }
  0x21   : > { %s1164_s21 = sshll.u32 %s1522_s10, 5  ;;  %s255_s16 = scalar_lea.vmem [#allocation4], %s1109_s18 }
  0x22   : > { %s260_s23 = scalar_lea.hbm %s2065_s0, %s1164_s21  ;;  %s263_s27 = sshll.u32 %s255_s16, 4  ;;  %s264_s27 = int_to_ptr.vmem [resolvable:$true] %s263_s27 }
  0x23   : > { %s261_s7 = sshll.u32 %s260_s23, 4  ;;  %p1170_p4 = pnand %p1177_p1, %p1639_p3  ;;  %s262_s7 = int_to_ptr.hbm [resolvable:$true] %s261_s7 }
  0x24   : > { %p1112_p5 = scmp.ge.s32.totalorder %s1526_s11, 1  ;;  %s252_s13 = scalar_lea.sflag [#allocation5], %s251_s12 }
  0x25   : > { %s1528_s19 = smov 256   ;;  %s1529_s14 = smov 16  }
  0x26   : > { %1172 = dma.hbm_to_vmem [thread:$0]  (!%p1170_p4), %s262_s7, 512, %s264_s27, %s252_s13, %s1528_s19, %s1528_s19, %s1529_s14  }
  0x27   : > { %p271_p6 = scmp.lt.s32.totalorder %s1526_s11, 5 }
  0x29   : > { %p272_p8 = pnand %p1112_p5, %p271_p6 }
  0x2a   : > { %s277_s10 = sand.u32 (!%p272_p8), 1, %s1502_s28  }
  0x2b   : > { %275 = sbr.rel (%p272_p8) target bundleno = 1244 (0x4dc), region = 48  ;;  %s1113_s15 = sshll.u32 (!%p272_p8), %s277_s10, 5 }
  0x2c   : > { %s278_s21 = scalar_lea.sflag (!%p272_p8), [#allocation5], %s277_s10  ;;  %s1684_s18 = scalar_lea.vmem (!%p272_p8), [#allocation4], %s1113_s15 }
  0x30   : > { %1477 = dma.done.wait (%p1649_p7), %s278_s21, 512  }
  0x31   : > { %1479 = vsyncadd (%p1649_p7), %s278_s21, 4294966784  ;;  %s310_s17 = sand.u32 1, %s1490_s25   ;;  %p1115_p3 = scmp.ne.s32.totalorder %s1510_s30, 0 }
  0x32   : > { %s1114_s7 = sshll.u32 %s310_s17, 4 }
  0x33   : > { %s1693_s14 = scalar_lea.vmem [#allocation7], %s1114_s7  ;;  %316 = sbr.rel (%p1115_p3) target bundleno = 204 (0xcc), region = 56 }
  0x38   : > { %v319_v0 = vld [vmem:[%s1684_s18 + $0x10] sm:$0xff]  ;;  %v320_v1 = vld [vmem:[%s1684_s18 + $0x18] sm:$0xff]  ;;  %v317_v2 = vld [vmem:[%s1684_s18] sm:$0xff]  ;;  %vm328_vm0 = vcmask 130048   ;;  %v1530_v8 = vmov 0   ;;  %vm375_vm1 = vcmask 1041408  }
  0x39   : > { %413 = vmatpush.msra.mxu2 %v319_v0  ;;  %436 = vmatpush.msra.mxu3 %v320_v1  ;;  %v318_v3 = vld [vmem:[%s1684_s18 + $0x8] sm:$0xff]  ;;  %v379_v4 = vld [vmem:[%s2070_s5] sm:$0xff]  ;;  %v382_v7 = vld [vmem:[%s2071_s6 + $0x8] sm:$0xff] }
  0x3a   : > { %366 = vmatpush.msra.mxu1 %v320_v1  ;;  %346 = vmatpush.msra.mxu0 %v319_v0  ;;  %v321_v5 = vld [vmem:[%s2068_s3] sm:$0x3]  ;;  %v380_v9 = vld [vmem:[%s2070_s5 + $0x8] sm:$0xff] }
  0x3b   : > { %414 = vmatpush.msra.mxu2 %v317_v2  ;;  %437 = vmatpush.msra.mxu3 %v318_v3  ;;  %v322_v6 = vld [vmem:[%s2069_s4] sm:$0x3] }
  0x3c   : > { %1118 = vmatmul.msk.f32.vlgmr.msra.gmra.mxu2 %vm328_vm0, %v379_v4  ;;  %1120 = vmatmul.msk.f32.vlgmr.msra.gmra.mxu3 %vm328_vm0, %v379_v4  ;;  %v381_v10 = vld [vmem:[%s2071_s6] sm:$0xff] }
  0x3d   : > { %367 = vmatpush.msra.mxu1 %v318_v3  ;;  %347 = vmatpush.msra.mxu0 %v317_v2 }
  0x3e   : > { %1117 = vmatmul.msk.f32.vlgmr.msra.gmra.mxu1 %vm328_vm0, %v321_v5  ;;  %1116 = vmatmul.msk.f32.vlgmr.msra.gmra.mxu0 %vm328_vm0, %v321_v5 }
  0x3f   : > { %1275 = vset.pattern.permute.xlu0 %v1530_v8  ;;  %1276 = vset.pattern.permute.xlu1 %v1530_v8 }
  0x40   : > { %325 = vperm.xlu0 %1275, %v322_v6   ;;  %390 = vperm.xlu1 %1276, %v382_v7  }
  0x44   : > { %1119 = vmatmul.msk.f32.gmra.mxu2 %vm328_vm0, %v380_v9  ;;  %1121 = vmatmul.msk.f32.gmra.mxu3 %vm328_vm0, %v380_v9 }
  0x48   : > { %385 = vperm.xlu0 %1275, %v381_v10  }
  0xb2   : > { %v326_v11 = vpop.permute.xlu0 %325  ;;  %v391_v23 = vpop.permute.xlu1 %390 }
  0xba   : > { %v386_v16 = vpop.permute.xlu0 %385 }
  0xbb   : > { %v369_v12 = vpop.f32.mrf.mxu1  ;;  %v349_v13 = vpop.f32.mrf.mxu0 }
  0xbc   : > { %v370_v14 = vadd.f32 %v369_v12, %v326_v11  ;;  %v350_v15 = vadd.f32 %v349_v13, %v326_v11 }
  0xbe   : > { %v374_v17 = vrot.slane %v370_v14, 6 }
  0xbf   : > { %v416_v18 = vpop.f32.mrf.mxu2  ;;  %v439_v19 = vpop.f32.mrf.mxu3 }
  0xc0   : > { %v376_v20 = vsel %vm375_vm1, %v350_v15, %v374_v17  ;;  %v417_v21 = vadd.f32 %v416_v18, %v386_v16  ;;  %v440_v22 = vadd.f32 %v439_v19, %v386_v16 }
  0xc1   : > { %378 = vst [vmem:[#allocation2] sm:$0xf] %v376_v20 }
  0xc2   : > { %445 = vst [vmem:[#allocation3 + $0x10] sm:$0xff] %v417_v21 }
  0xc3   : > { %446 = vst [vmem:[#allocation3] sm:$0xff] %v440_v22 }
  0xc7   : > { %v419_v24 = vpop.f32.mrf.mxu2  ;;  %v442_v25 = vpop.f32.mrf.mxu3 }
  0xc8   : > { %v420_v26 = vadd.f32 %v419_v24, %v391_v23  ;;  %v443_v27 = vadd.f32 %v442_v25, %v391_v23 }
  0xca   : > { %447 = vst [vmem:[#allocation3 + $0x18] sm:$0xff] %v420_v26 }
  0xcb   : > { %448 = vst [vmem:[#allocation3 + $0x8] sm:$0xff] %v443_v27 }
  0xcc PF: > { %s1122_s10 = sshll.u32 %s1510_s30, 7  ;;  %v1531_v28 = vmov 0   ;;  %v457_v29 = vld [vmem:[%s2067_s2] sm:$0x3]  ;;  %vm463_vm2 = vcmask 130048   ;;  %vm573_vm3 = vcmask 1041408  }
  0xcd   : > { %s450_s20 = sshra.s32 %s1122_s10, 7  ;;  %1277 = vset.pattern.permute.xlu0 %v1531_v28  ;;  %v456_v32 = vld [vmem:[%s2066_s1] sm:$0x3]  ;;  %v487_v33 = vld [vmem:[#allocation2] sm:$0xf]  ;;  %vm524_vm4 = vcmask 15360  }
  0xce   : > { %s1123_s12 = sshll.u32 %s450_s20, 3  ;;  %460 = vperm.xlu0 %1277, %v457_v29   ;;  %521 = vst [vmem:[#allocation1] ss:$4 sm:$0xff] %v487_v33  ;;  %s2092_s10 = sld [smem:[#allocation17_spill]] }
  0xcf   : > { %s453_s22 = scalar_lea.vmem %s1684_s18, %s1123_s12 [#allocation4]  ;;  %s1160_s18 = sshll.u32 %s1514_s8, 2 }
  0xd0   : > { %v1729_v30 = vld [vmem:[%s453_s22 + $0x10] sm:$0xff]  ;;  %v1731_v31 = vld [vmem:[%s453_s22] sm:$0xff]  ;;  %s1011_s19 = sadd.s32 %s1510_s30, %s1160_s18  ;;  %s1014_s12 = sshll.u32 %s1693_s14, 4  ;;  %s1015_s12 = int_to_ptr.vmem [resolvable:$true] %s1014_s12 }
  0xd1   : > { %481 = vmatpush.msra.mxu0 %v1729_v30  ;;  %s1161_s15 = sshll.u32 %s1011_s19, 3  ;;  %s1001_s30 = scalar_lea.sflag [#allocation6], %s310_s17 }
  0xd3   : > { %482 = vmatpush.msra.mxu0 %v1731_v31 }
  0xd4   : > { %1124 = vmatmul.msk.f32.vlgmr.msra.gmra.mxu0 %vm463_vm2, %v456_v32  ;;  %s2093_s20 = smov %s2092_s10  ;;  %s1013_s23 = scalar_lea.hbm %s2092_s10, %s1161_s15 }
  0xd5   : > { %v522_v34 = vld.sshfl [vmem:[#allocation1] sm:$0xff pattern:$0x73625140]  ;;  %v523_v35 = vld.sshfl [vmem:[#allocation1 + $0x8] sm:$0xff pattern:$0x73625140] }
  0xd6   : > { %1125 = vmatpush.msk.msra.mxu1 %vm573_vm3, %v522_v34  ;;  %1142 = vmatpush.msk.msra.mxu2 %vm573_vm3, %v523_v35  ;;  %s1016_s22 = sshll.u32 %s1013_s23, 4  ;;  %s1424_s19 = scalar_lea.hbm %s2093_s20, 64  ;;  %s1017_s22 = int_to_ptr.hbm [resolvable:$true] %s1016_s22 }
  0xd7   : > { %s1418_s8 = sshra.s32 %s1017_s22, 4  ;;  %s1419_s8 = int_to_ptr.hbm [resolvable:$true] %s1418_s8 }
  0xd8   : > { %s1420_s16 = scalar_lea.hbm %s1419_s8, 16  ;;  %p1425_p11 = scmp.lt.s32.totalorder %s1419_s8, %s2093_s20 }
  0xd9   : > { %p1421_p7 = scmp.ne.s32.totalorder %s1419_s8, %s1420_s16  ;;  %p1426_p13 = scmp.lt.s32.totalorder %s1424_s19, %s1420_s16 }
  0xdb   : > { %p1422_p9 = pnand %p1421_p7, %p1657_p12  ;;  %p1427_p0 = por %p1426_p13, %p1425_p11 }
  0xdd   : > { %p1423_p10 = pneg %p1422_p9 }
  0xdf   : > { %p1428_p1 = pnand %p1427_p0, %p1423_p10 }
 0x140   : > { %v461_v36 = vpop.permute.xlu0 %460 }
 0x151   : > { %v484_v37 = vpop.f32.mrf.mxu0 }
 0x152   : > { %v485_v38 = vadd.f32 %v484_v37, %v461_v36 }
 0x154   : > { %488 = vxpose.xlu0.b32.start.end [1/1] (short) %v485_v38, 128 }
 0x1f8   : > { %v504_v39 = vpop.trf.xlu0 }
 0x1f9   : > { %1126 = vmatmul.msk.f32.vlgmr.msra.gmra.mxu1 %vm524_vm4, %v504_v39  ;;  %1143 = vmatmul.msk.f32.vlgmr.msra.gmra.mxu2 %vm524_vm4, %v504_v39 }
 0x200   : > { %v505_v40 = vpop.trf.xlu0 }
 0x201   : > { %1127 = vmatmul.msk.f32.gmra.mxu1 %vm524_vm4, %v505_v40  ;;  %1144 = vmatmul.msk.f32.gmra.mxu2 %vm524_vm4, %v505_v40 }
 0x208   : > { %v506_v41 = vpop.trf.xlu0 }
 0x209   : > { %1128 = vmatmul.msk.f32.gmra.mxu1 %vm524_vm4, %v506_v41  ;;  %1145 = vmatmul.msk.f32.gmra.mxu2 %vm524_vm4, %v506_v41 }
 0x210   : > { %v507_v42 = vpop.trf.xlu0 }
 0x211   : > { %1129 = vmatmul.msk.f32.gmra.mxu1 %vm524_vm4, %v507_v42  ;;  %1146 = vmatmul.msk.f32.gmra.mxu2 %vm524_vm4, %v507_v42 }
 0x218   : > { %v508_v43 = vpop.trf.xlu0 }
 0x219   : > { %1130 = vmatmul.msk.f32.gmra.mxu1 %vm524_vm4, %v508_v43  ;;  %1147 = vmatmul.msk.f32.gmra.mxu2 %vm524_vm4, %v508_v43 }
 0x220   : > { %v509_v44 = vpop.trf.xlu0 }
 0x221   : > { %1131 = vmatmul.msk.f32.gmra.mxu1 %vm524_vm4, %v509_v44  ;;  %1148 = vmatmul.msk.f32.gmra.mxu2 %vm524_vm4, %v509_v44 }
 0x228   : > { %v510_v45 = vpop.trf.xlu0 }
 0x229   : > { %1132 = vmatmul.msk.f32.gmra.mxu1 %vm524_vm4, %v510_v45  ;;  %1149 = vmatmul.msk.f32.gmra.mxu2 %vm524_vm4, %v510_v45 }
 0x230   : > { %v511_v46 = vpop.trf.xlu0 }
 0x231   : > { %1133 = vmatmul.msk.f32.gmra.mxu1 %vm524_vm4, %v511_v46  ;;  %1150 = vmatmul.msk.f32.gmra.mxu2 %vm524_vm4, %v511_v46 }
 0x238   : > { %v512_v47 = vpop.trf.xlu0 }
 0x239   : > { %1134 = vmatmul.msk.f32.gmra.mxu1 %vm524_vm4, %v512_v47  ;;  %1151 = vmatmul.msk.f32.gmra.mxu2 %vm524_vm4, %v512_v47 }
 0x240   : > { %v513_v48 = vpop.trf.xlu0 }
 0x241   : > { %1135 = vmatmul.msk.f32.gmra.mxu1 %vm524_vm4, %v513_v48  ;;  %1152 = vmatmul.msk.f32.gmra.mxu2 %vm524_vm4, %v513_v48 }
 0x248   : > { %v514_v49 = vpop.trf.xlu0 }
 0x249   : > { %1136 = vmatmul.msk.f32.gmra.mxu1 %vm524_vm4, %v514_v49  ;;  %1153 = vmatmul.msk.f32.gmra.mxu2 %vm524_vm4, %v514_v49 }
 0x250   : > { %v515_v50 = vpop.trf.xlu0 }
 0x251   : > { %1137 = vmatmul.msk.f32.gmra.mxu1 %vm524_vm4, %v515_v50  ;;  %1154 = vmatmul.msk.f32.gmra.mxu2 %vm524_vm4, %v515_v50 }
 0x258   : > { %v516_v51 = vpop.trf.xlu0 }
 0x259   : > { %1138 = vmatmul.msk.f32.gmra.mxu1 %vm524_vm4, %v516_v51  ;;  %1155 = vmatmul.msk.f32.gmra.mxu2 %vm524_vm4, %v516_v51 }
 0x260   : > { %v517_v52 = vpop.trf.xlu0 }
 0x261   : > { %1139 = vmatmul.msk.f32.gmra.mxu1 %vm524_vm4, %v517_v52  ;;  %1156 = vmatmul.msk.f32.gmra.mxu2 %vm524_vm4, %v517_v52 }
 0x268   : > { %v518_v53 = vpop.trf.xlu0 }
 0x269   : > { %1140 = vmatmul.msk.f32.gmra.mxu1 %vm524_vm4, %v518_v53  ;;  %1157 = vmatmul.msk.f32.gmra.mxu2 %vm524_vm4, %v518_v53 }
 0x270   : > { %v519_v54 = vpop.trf.xlu0 }
 0x271   : > { %1141 = vmatmul.msk.f32.gmra.mxu1 %vm524_vm4, %v519_v54  ;;  %1158 = vmatmul.msk.f32.gmra.mxu2 %vm524_vm4, %v519_v54 }
 0x276   : > { %v1770_v55 = vpop.f32.mrf.mxu1 }
 0x27c   : > { %v1772_v56 = vpop.f32.mrf.mxu2 }
 0x27d   : > { %v708_v40 = vmax.f32 %v1770_v55, %v1772_v56 }
 0x27e   : > { %v1774_v57 = vpop.f32.mrf.mxu1 }
 0x284   : > { %v1776_v58 = vpop.f32.mrf.mxu2 }
 0x285   : > { %v711_v39 = vmax.f32 %v1774_v57, %v1776_v58 }
 0x286   : > { %v1778_v59 = vpop.f32.mrf.mxu1 }
 0x28c   : > { %v1780_v60 = vpop.f32.mrf.mxu2 }
 0x28d   : > { %v714_v38 = vmax.f32 %v1778_v59, %v1780_v60 }
 0x28e   : > { %v1782_v61 = vpop.f32.mrf.mxu1 }
 0x294   : > { %v1784_v62 = vpop.f32.mrf.mxu2 }
 0x295   : > { %v717_v63 = vmax.f32 %v1782_v61, %v1784_v62 }
 0x296   : > { %v1788_v0 = vpop.f32.mrf.mxu1 }
 0x297   : > { %718 = vmax.xlane.f32.xlu0 %v717_v63 }
 0x29c   : > { %v1790_v1 = vpop.f32.mrf.mxu2 }
 0x29d   : > { %v720_v34 = vmax.f32 %v1788_v0, %v1790_v1 }
 0x29e   : > { %v1792_v2 = vpop.f32.mrf.mxu1 }
 0x2a4   : > { %v1794_v3 = vpop.f32.mrf.mxu2 }
 0x2a5   : > { %v723_v37 = vmax.f32 %v1792_v2, %v1794_v3 }
 0x2a6   : > { %v1796_v4 = vpop.f32.mrf.mxu1 }
 0x2ac   : > { %v1798_v5 = vpop.f32.mrf.mxu2 }
 0x2ad   : > { %v726_v32 = vmax.f32 %v1796_v4, %v1798_v5 }
 0x2ae   : > { %v1800_v6 = vpop.f32.mrf.mxu1 }
 0x2b4   : > { %v1802_v7 = vpop.f32.mrf.mxu2 }
 0x2b5   : > { %v729_v36 = vmax.f32 %v1800_v6, %v1802_v7 }
 0x2b6   : > { %v1804_v8 = vpop.f32.mrf.mxu1 }
 0x2bc   : > { %v1806_v9 = vpop.f32.mrf.mxu2 }
 0x2bd   : > { %v732_v28 = vmax.f32 %v1804_v8, %v1806_v9 }
 0x2be   : > { %v1808_v10 = vpop.f32.mrf.mxu1 }
 0x2c4   : > { %v1810_v11 = vpop.f32.mrf.mxu2 }
 0x2c5   : > { %v735_v35 = vmax.f32 %v1808_v10, %v1810_v11 }
 0x2c6   : > { %v625_v12 = vpop.f32.mrf.mxu1 }
 0x2cc   : > { %v690_v13 = vpop.f32.mrf.mxu2 }
 0x2cd   : > { %v738_v26 = vmax.f32 %v625_v12, %v690_v13 }
 0x2ce   : > { %v1812_v14 = vpop.f32.mrf.mxu1 }
 0x2d4   : > { %v1814_v15 = vpop.f32.mrf.mxu2 }
 0x2d5   : > { %v741_v33 = vmax.f32 %v1812_v14, %v1814_v15 }
 0x2d6   : > { %v631_v16 = vpop.f32.mrf.mxu1 }
 0x2dc   : > { %v696_v17 = vpop.f32.mrf.mxu2 }
 0x2dd   : > { %v744_v23 = vmax.f32 %v631_v16, %v696_v17 }
 0x2de   : > { %v1816_v18 = vpop.f32.mrf.mxu1 }
 0x2e4   : > { %v1818_v19 = vpop.f32.mrf.mxu2 }
 0x2e5   : > { %v747_v20 = vmax.f32 %v1816_v18, %v1818_v19 }
 0x2e6   : > { %v637_v21 = vpop.f32.mrf.mxu1 }
 0x2e7   : > { %748 = vmax.xlane.f32.xlu2 %v747_v20 }
 0x2ec   : > { %v1822_v22 = vpop.f32.mrf.mxu2 }
 0x2ed   : > { %v750_v29 = vmax.f32 %v637_v21, %v1822_v22 }
 0x2ee   : > { %v1824_v24 = vpop.f32.mrf.mxu1 }
 0x2ef   : > { %745 = vmax.xlane.f32.xlu2 %v744_v23 }
 0x2f4   : > { %v1826_v25 = vpop.f32.mrf.mxu2 }
 0x2f5   : > { %v753_v27 = vmax.f32 %v1824_v24, %v1826_v25 }
 0x2f7   : > { %739 = vmax.xlane.f32.xlu2 %v738_v26  ;;  %754 = vmax.xlane.f32.xlu1 %v753_v27 }
 0x2ff   : > { %733 = vmax.xlane.f32.xlu2 %v732_v28  ;;  %751 = vmax.xlane.f32.xlu1 %v750_v29 }
 0x307   : > { %727 = vmax.xlane.f32.xlu2 %v726_v32  ;;  %742 = vmax.xlane.f32.xlu1 %v741_v33 }
 0x30f   : > { %721 = vmax.xlane.f32.xlu2 %v720_v34  ;;  %736 = vmax.xlane.f32.xlu1 %v735_v35 }
 0x317   : > { %730 = vmax.xlane.f32.xlu1 %v729_v36 }
 0x31f   : > { %724 = vmax.xlane.f32.xlu1 %v723_v37 }
 0x327   : > { %715 = vmax.xlane.f32.xlu1 %v714_v38 }
 0x32f   : > { %712 = vmax.xlane.f32.xlu1 %v711_v39 }
 0x337   : > { %709 = vmax.xlane.f32.xlu1 %v708_v40 }
 0x35a   : > { %v749_v41 = vpop.xlane.xlu2 %748 }
 0x362   : > { %v746_v42 = vpop.xlane.xlu2 %745 }
 0x363   : > { %v780_v43 = vsub.f32 %v631_v16, %v746_v42  ;;  %v781_v44 = vsub.f32 %v696_v17, %v746_v42 }
 0x365   : > { %v836_v45 = vmul.f32 1.442695, %v780_v43  ;;  %v838_v46 = vmul.f32 1.442695, %v781_v44  ;;  %v783_v43 = vsub.f32 %v1818_v19, %v749_v41 }
 0x367   : > { %1278 = vpow2.f32 %v836_v45 }
 0x368   : > { %1280 = vpow2.f32 %v838_v46  ;;  %v842_v46 = vmul.f32 1.442695, %v783_v43 }
 0x36a   : > { %v740_v47 = vpop.xlane.xlu2 %739  ;;  %v755_v48 = vpop.xlane.xlu1 %754 }
 0x36b   : > { %v776_v49 = vsub.f32 %v625_v12, %v740_v47  ;;  %v777_v50 = vsub.f32 %v690_v13, %v740_v47  ;;  %v786_v27 = vsub.f32 %v1824_v24, %v755_v48  ;;  %v787_v34 = vsub.f32 %v1826_v25, %v755_v48 }
 0x36c   : > { %v782_v25 = vsub.f32 %v1816_v18, %v749_v41 }
 0x36d   : > { %v1851_v51 = vpop.eup %1278  ;;  %v828_v52 = vmul.f32 1.442695, %v776_v49  ;;  %v830_v53 = vmul.f32 1.442695, %v777_v50 }
 0x36e   : > { %v1853_v54 = vpop.eup %1280 }
 0x36f   : > { %1282 = vpow2.f32 %v828_v52  ;;  %v888_v63 = vadd.f32 %v1853_v54, %v1851_v51 }
 0x370   : > { %1284 = vpow2.f32 %v830_v53 }
 0x371   : > { %889 = vadd.xlane.f32.xlu1 %v888_v63 }
 0x372   : > { %v734_v16 = vpop.xlane.xlu2 %733  ;;  %v752_v17 = vpop.xlane.xlu1 %751 }
 0x373   : > { %v772_v20 = vsub.f32 %v1804_v8, %v734_v16  ;;  %v773_v23 = vsub.f32 %v1806_v9, %v734_v16  ;;  %v784_v12 = vsub.f32 %v637_v21, %v752_v17  ;;  %v785_v13 = vsub.f32 %v1822_v22, %v752_v17 }
 0x374   : > { %v848_v9 = vmul.f32 1.442695, %v786_v27  ;;  %v850_v21 = vmul.f32 1.442695, %v787_v34 }
 0x375   : > { %v1860_v26 = vpop.eup %1282  ;;  %v820_v28 = vmul.f32 1.442695, %v772_v20  ;;  %v822_v29 = vmul.f32 1.442695, %v773_v23  ;;  %v844_v32 = vmul.f32 1.442695, %v784_v12 }
 0x376   : > { %v1863_v33 = vpop.eup %1284  ;;  %v846_v35 = vmul.f32 1.442695, %v785_v13 }
 0x377   : > { %1286 = vpow2.f32 %v820_v28  ;;  %v882_v8 = vadd.f32 %v1863_v33, %v1860_v26 }
 0x378   : > { %1288 = vpow2.f32 %v822_v29 }
 0x379   : > { %1290 = vpow2.f32 %v844_v32  ;;  %883 = vadd.xlane.f32.xlu1 %v882_v8 }
 0x37a   : > { %1292 = vpow2.f32 %v846_v35  ;;  %v728_v22 = vpop.xlane.xlu2 %727  ;;  %v743_v24 = vpop.xlane.xlu1 %742 }
 0x37b   : > { %v768_v36 = vsub.f32 %v1796_v4, %v728_v22  ;;  %v769_v37 = vsub.f32 %v1798_v5, %v728_v22  ;;  %1294 = vpow2.f32 %v848_v9  ;;  %v840_v5 = vmul.f32 1.442695, %v782_v25 }
 0x37c   : > { %1296 = vpow2.f32 %v850_v21  ;;  %v778_v17 = vsub.f32 %v1812_v14, %v743_v24 }
 0x37d   : > { %v1870_v38 = vpop.eup %1286  ;;  %v812_v39 = vmul.f32 1.442695, %v768_v36  ;;  %v814_v40 = vmul.f32 1.442695, %v769_v37 }
 0x37e   : > { %v1873_v42 = vpop.eup %1288  ;;  %v832_v13 = vmul.f32 1.442695, %v778_v17 }
 0x37f   : > { %v1876_v44 = vpop.eup %1290  ;;  %1298 = vpow2.f32 %v812_v39  ;;  %v876_v4 = vadd.f32 %v1873_v42, %v1870_v38 }
 0x380   : > { %v1880_v45 = vpop.eup %1292  ;;  %1300 = vpow2.f32 %v814_v40 }
 0x381   : > { %877 = vadd.xlane.f32.xlu1 %v876_v4  ;;  %v894_v18 = vadd.f32 %v1880_v45, %v1876_v44  ;;  %v1884_v49 = vpop.eup %1294  ;;  %1302 = vpow2.f32 %v840_v5 }
 0x382   : > { %v722_v47 = vpop.xlane.xlu2 %721  ;;  %v737_v48 = vpop.xlane.xlu1 %736  ;;  %1304 = vpow2.f32 %v842_v46 }
 0x383   : > { %895 = vadd.xlane.f32.xlu2 %v894_v18  ;;  %v764_v19 = vsub.f32 %v1788_v0, %v722_v47  ;;  %v765_v41 = vsub.f32 %v1790_v1, %v722_v47  ;;  %v1888_v50 = vpop.eup %1296  ;;  %v779_v0 = vsub.f32 %v1814_v15, %v743_v24  ;;  %v774_v15 = vsub.f32 %v1808_v10, %v737_v48 }
 0x384   : > { %v897_v1 = vadd.f32 %v1888_v50, %v1884_v49  ;;  %v775_v34 = vsub.f32 %v1810_v11, %v737_v48 }
 0x385   : > { %v1890_v52 = vpop.eup %1298  ;;  %v804_v53 = vmul.f32 1.442695, %v764_v19  ;;  %v806_v63 = vmul.f32 1.442695, %v765_v41  ;;  %v834_v28 = vmul.f32 1.442695, %v779_v0 }
 0x386   : > { %v1892_v16 = vpop.eup %1300  ;;  %v824_v9 = vmul.f32 1.442695, %v774_v15  ;;  %v826_v21 = vmul.f32 1.442695, %v775_v34 }
 0x387   : > { %1306 = vpow2.f32 %v804_v53  ;;  %v870_v20 = vadd.f32 %v1892_v16, %v1890_v52  ;;  %v1900_v12 = vpop.eup %1302 }
 0x388   : > { %1308 = vpow2.f32 %v806_v63  ;;  %v1902_v27 = vpop.eup %1304 }
 0x389   : > { %871 = vadd.xlane.f32.xlu1 %v870_v20  ;;  %1310 = vpow2.f32 %v832_v13  ;;  %v891_v35 = vadd.f32 %v1902_v27, %v1900_v12 }
 0x38a   : > { %v731_v23 = vpop.xlane.xlu1 %730  ;;  %1312 = vpow2.f32 %v834_v28 }
 0x38b   : > { %898 = vadd.xlane.f32.xlu2 %v897_v1  ;;  %v770_v24 = vsub.f32 %v1800_v6, %v731_v23  ;;  %v771_v10 = vsub.f32 %v1802_v7, %v731_v23  ;;  %1314 = vpow2.f32 %v824_v9 }
 0x38c   : > { %1316 = vpow2.f32 %v826_v21 }
 0x38d   : > { %v1904_v14 = vpop.eup %1306  ;;  %v816_v37 = vmul.f32 1.442695, %v770_v24  ;;  %v818_v25 = vmul.f32 1.442695, %v771_v10 }
 0x38e   : > { %v1906_v29 = vpop.eup %1308 }
 0x38f   : > { %v864_v32 = vadd.f32 %v1906_v29, %v1904_v14  ;;  %v1914_v22 = vpop.eup %1310  ;;  %1318 = vpow2.f32 %v816_v37 }
 0x390   : > { %v1917_v36 = vpop.eup %1312  ;;  %1320 = vpow2.f32 %v818_v25 }
 0x391   : > { %865 = vadd.xlane.f32.xlu1 %v864_v32  ;;  %v885_v11 = vadd.f32 %v1917_v36, %v1914_v22  ;;  %v1924_v4 = vpop.eup %1314 }
 0x392   : > { %v725_v8 = vpop.xlane.xlu1 %724  ;;  %v1926_v18 = vpop.eup %1316 }
 0x393   : > { %892 = vadd.xlane.f32.xlu2 %v891_v35  ;;  %v766_v7 = vsub.f32 %v1792_v2, %v725_v8  ;;  %v767_v46 = vsub.f32 %v1794_v3, %v725_v8  ;;  %v879_v47 = vadd.f32 %v1926_v18, %v1924_v4 }
 0x395   : > { %v808_v19 = vmul.f32 1.442695, %v766_v7  ;;  %v810_v53 = vmul.f32 1.442695, %v767_v46 }
 0x39a   : > { %v716_v39 = vpop.xlane.xlu1 %715 }
 0x39b   : > { %886 = vadd.xlane.f32.xlu2 %v885_v11  ;;  %v760_v40 = vsub.f32 %v1778_v59, %v716_v39  ;;  %v761_v43 = vsub.f32 %v1780_v60, %v716_v39  ;;  %v719_v59 = vpop.xlane.xlu0 %718  ;;  %v1932_v60 = vpop.eup %1318 }
 0x39c   : > { %v1934_v41 = vpop.eup %1320  ;;  %v762_v2 = vsub.f32 %v1782_v61, %v719_v59  ;;  %v763_v3 = vsub.f32 %v1784_v62, %v719_v59 }
 0x39d   : > { %v796_v6 = vmul.f32 1.442695, %v760_v40  ;;  %v798_v5 = vmul.f32 1.442695, %v761_v43  ;;  %v873_v1 = vadd.f32 %v1934_v41, %v1932_v60 }
 0x39e   : > { %v800_v0 = vmul.f32 1.442695, %v762_v2  ;;  %v802_v23 = vmul.f32 1.442695, %v763_v3 }
 0x39f   : > { %1322 = vpow2.f32 %v796_v6 }
 0x3a0   : > { %1324 = vpow2.f32 %v798_v5 }
 0x3a1   : > { %1326 = vpow2.f32 %v808_v19 }
 0x3a2   : > { %v713_v48 = vpop.xlane.xlu1 %712  ;;  %1328 = vpow2.f32 %v810_v53 }
 0x3a3   : > { %880 = vadd.xlane.f32.xlu2 %v879_v47  ;;  %1330 = vpow2.f32 %v800_v0  ;;  %v758_v35 = vsub.f32 %v1774_v57, %v713_v48  ;;  %v759_v8 = vsub.f32 %v1776_v58, %v713_v48 }
 0x3a4   : > { %1332 = vpow2.f32 %v802_v23 }
 0x3a5   : > { %v1936_v63 = vpop.eup %1322  ;;  %v794_v24 = vmul.f32 1.442695, %v759_v8 }
 0x3a6   : > { %v1939_v17 = vpop.eup %1324 }
 0x3a7   : > { %v858_v20 = vadd.f32 %v1939_v17, %v1936_v63  ;;  %v1948_v15 = vpop.eup %1326 }
 0x3a8   : > { %v1950_v34 = vpop.eup %1328 }
 0x3a9   : > { %859 = vadd.xlane.f32.xlu1 %v858_v20  ;;  %v867_v9 = vadd.f32 %v1950_v34, %v1948_v15 }
 0x3aa   : > { %v710_v13 = vpop.xlane.xlu1 %709 }
 0x3ab   : > { %874 = vadd.xlane.f32.xlu2 %v873_v1  ;;  %v756_v28 = vsub.f32 %v1770_v55, %v710_v13  ;;  %v757_v61 = vsub.f32 %v1772_v56, %v710_v13  ;;  %v1956_v55 = vpop.eup %1330  ;;  %v792_v56 = vmul.f32 1.442695, %v758_v35 }
 0x3ac   : > { %v1958_v21 = vpop.eup %1332 }
 0x3ad   : > { %v788_v62 = vmul.f32 1.442695, %v756_v28  ;;  %v790_v32 = vmul.f32 1.442695, %v757_v61  ;;  %v861_v58 = vadd.f32 %v1958_v21, %v1956_v55 }
 0x3af   : > { %1334 = vpow2.f32 %v788_v62 }
 0x3b0   : > { %1336 = vpow2.f32 %v790_v32 }
 0x3b1   : > { %1338 = vpow2.f32 %v792_v56 }
 0x3b2   : > { %1340 = vpow2.f32 %v794_v24 }
 0x3b3   : > { %868 = vadd.xlane.f32.xlu2 %v867_v9 }
 0x3b5   : > { %v1960_v10 = vpop.eup %1334 }
 0x3b6   : > { %v1962_v37 = vpop.eup %1336 }
 0x3b7   : > { %v852_v57 = vadd.f32 %v1962_v37, %v1960_v10  ;;  %v1968_v11 = vpop.eup %1338 }
 0x3b8   : > { %v1970_v25 = vpop.eup %1340 }
 0x3b9   : > { %853 = vadd.xlane.f32.xlu1 %v852_v57  ;;  %v855_v39 = vadd.f32 %v1970_v25, %v1968_v11 }
 0x3bb   : > { %862 = vadd.xlane.f32.xlu2 %v861_v58 }
 0x3c3   : > { %856 = vadd.xlane.f32.xlu2 %v855_v39 }
 0x3e4   : > { %v890_v43 = vpop.xlane.xlu1 %889 }
 0x3ec   : > { %v884_v48 = vpop.xlane.xlu1 %883 }
 0x3f6   : > { %v896_v40 = vpop.xlane.xlu2 %895 }
 0x3fe   : > { %v899_v6 = vpop.xlane.xlu2 %898 }
 0x3ff   : > { %1342 = vrcp.f32 %v899_v6 }
 0x400   : > { %1344 = vrcp.f32 %v896_v40 }
 0x405   : > { %v1343_v5 = vpop.eup %1342 }
 0x406   : > { %v893_v7 = vpop.xlane.xlu2 %892  ;;  %v946_v46 = vmul.f32 %v1343_v5, %v1884_v49  ;;  %v947_v47 = vmul.f32 %v1343_v5, %v1888_v50  ;;  %v1345_v59 = vpop.eup %1344 }
 0x407   : > { %1346 = vrcp.f32 %v893_v7  ;;  %v944_v19 = vmul.f32 %v1345_v59, %v1876_v44  ;;  %v945_v53 = vmul.f32 %v1345_v59, %v1880_v45  ;;  %v878_v50 = vpop.xlane.xlu1 %877 }
 0x408   : > { %952 = vmatpush.xpose.msra.mxu3 %v946_v46  ;;  %975 = vmatpush.xpose.msrb.mxu0 %v947_v47  ;;  %1348 = vrcp.f32 %v890_v43 }
 0x40c   : > { %953 = vmatpush.xpose.msra.mxu3 %v944_v19  ;;  %976 = vmatpush.xpose.msrb.mxu0 %v945_v53 }
 0x40d   : > { %v1347_v2 = vpop.eup %1346 }
 0x40e   : > { %v887_v3 = vpop.xlane.xlu2 %886  ;;  %v942_v20 = vmul.f32 %v1347_v2, %v1900_v12  ;;  %v943_v49 = vmul.f32 %v1347_v2, %v1902_v27  ;;  %v1349_v0 = vpop.eup %1348 }
 0x40f   : > { %1350 = vrcp.f32 %v887_v3  ;;  %v940_v1 = vmul.f32 %v1349_v0, %v1851_v51  ;;  %v941_v44 = vmul.f32 %v1349_v0, %v1853_v54  ;;  %v872_v51 = vpop.xlane.xlu1 %871 }
 0x410   : > { %954 = vmatpush.xpose.msra.mxu3 %v942_v20  ;;  %977 = vmatpush.xpose.msrb.mxu0 %v943_v49  ;;  %1352 = vrcp.f32 %v884_v48  ;;  %v951_v48 = vld [vmem:[#allocation3 + $0x8] sm:$0xff] }
 0x414   : > { %955 = vmatpush.xpose.msra.mxu3 %v940_v1  ;;  %978 = vmatpush.xpose.msrb.mxu0 %v941_v44 }
 0x415   : > { %v1351_v45 = vpop.eup %1350 }
 0x416   : > { %v881_v23 = vpop.xlane.xlu2 %880  ;;  %v938_v13 = vmul.f32 %v1351_v45, %v1914_v22  ;;  %v939_v12 = vmul.f32 %v1351_v45, %v1917_v36  ;;  %v1353_v28 = vpop.eup %1352 }
 0x417   : > { %1354 = vrcp.f32 %v881_v23  ;;  %v936_v27 = vmul.f32 %v1353_v28, %v1860_v26  ;;  %v937_v61 = vmul.f32 %v1353_v28, %v1863_v33  ;;  %v866_v8 = vpop.xlane.xlu1 %865 }
 0x418   : > { %956 = vmatpush.xpose.msra.mxu3 %v938_v13  ;;  %979 = vmatpush.xpose.msrb.mxu0 %v939_v12  ;;  %1356 = vrcp.f32 %v878_v50 }
 0x41c   : > { %957 = vmatpush.xpose.msra.mxu3 %v936_v27  ;;  %980 = vmatpush.xpose.msrb.mxu0 %v937_v61 }
 0x41d   : > { %v1355_v54 = vpop.eup %1354 }
 0x41e   : > { %v875_v62 = vpop.xlane.xlu2 %874  ;;  %v934_v32 = vmul.f32 %v1355_v54, %v1924_v4  ;;  %v935_v22 = vmul.f32 %v1355_v54, %v1926_v18  ;;  %v1357_v35 = vpop.eup %1356 }
 0x41f   : > { %1358 = vrcp.f32 %v875_v62  ;;  %v932_v36 = vmul.f32 %v1357_v35, %v1870_v38  ;;  %v933_v26 = vmul.f32 %v1357_v35, %v1873_v42  ;;  %v860_v57 = vpop.xlane.xlu1 %859 }
 0x420   : > { %958 = vmatpush.xpose.msra.mxu3 %v934_v32  ;;  %981 = vmatpush.xpose.msrb.mxu0 %v935_v22  ;;  %1360 = vrcp.f32 %v872_v51 }
 0x424   : > { %959 = vmatpush.xpose.msra.mxu3 %v932_v36  ;;  %982 = vmatpush.xpose.msrb.mxu0 %v933_v26 }
 0x425   : > { %v1359_v33 = vpop.eup %1358 }
 0x426   : > { %v869_v9 = vpop.xlane.xlu2 %868  ;;  %v930_v56 = vmul.f32 %v1359_v33, %v1932_v60  ;;  %v931_v4 = vmul.f32 %v1359_v33, %v1934_v41  ;;  %v1361_v24 = vpop.eup %1360 }
 0x427   : > { %1362 = vrcp.f32 %v869_v9  ;;  %v928_v18 = vmul.f32 %v1361_v24, %v1890_v52  ;;  %v929_v38 = vmul.f32 %v1361_v24, %v1892_v16 }
 0x428   : > { %960 = vmatpush.xpose.msra.mxu3 %v930_v56  ;;  %983 = vmatpush.xpose.msrb.mxu0 %v931_v4  ;;  %1364 = vrcp.f32 %v866_v8 }
 0x42c   : > { %961 = vmatpush.xpose.msra.mxu3 %v928_v18  ;;  %984 = vmatpush.xpose.msrb.mxu0 %v929_v38  ;;  %v854_v43 = vpop.xlane.xlu1 %853 }
 0x42d   : > { %v1363_v42 = vpop.eup %1362 }
 0x42e   : > { %v863_v58 = vpop.xlane.xlu2 %862  ;;  %v926_v39 = vmul.f32 %v1363_v42, %v1948_v15  ;;  %v927_v60 = vmul.f32 %v1363_v42, %v1950_v34  ;;  %v1365_v40 = vpop.eup %1364 }
 0x42f   : > { %1366 = vrcp.f32 %v863_v58  ;;  %v924_v41 = vmul.f32 %v1365_v40, %v1904_v14  ;;  %v925_v52 = vmul.f32 %v1365_v40, %v1906_v29 }
 0x430   : > { %962 = vmatpush.xpose.msra.mxu3 %v926_v39  ;;  %985 = vmatpush.xpose.msrb.mxu0 %v927_v60  ;;  %1368 = vrcp.f32 %v860_v57 }
 0x434   : > { %963 = vmatpush.xpose.msra.mxu3 %v924_v41  ;;  %986 = vmatpush.xpose.msrb.mxu0 %v925_v52 }
 0x435   : > { %v1367_v16 = vpop.eup %1366 }
 0x436   : > { %v857_v6 = vpop.xlane.xlu2 %856  ;;  %v922_v5 = vmul.f32 %v1367_v16, %v1956_v55  ;;  %v923_v15 = vmul.f32 %v1367_v16, %v1958_v21  ;;  %v1369_v7 = vpop.eup %1368 }
 0x437   : > { %1370 = vrcp.f32 %v857_v6  ;;  %v920_v34 = vmul.f32 %v1369_v7, %v1936_v63  ;;  %v921_v14 = vmul.f32 %v1369_v7, %v1939_v17  ;;  %v948_v63 = vld [vmem:[#allocation3 + $0x10] sm:$0xff]  ;;  %v949_v17 = vld [vmem:[#allocation3] sm:$0xff] }
 0x438   : > { %964 = vmatpush.xpose.msra.mxu3 %v922_v5  ;;  %987 = vmatpush.xpose.msrb.mxu0 %v923_v15  ;;  %1372 = vrcp.f32 %v854_v43 }
 0x43c   : > { %965 = vmatpush.xpose.msra.mxu3 %v920_v34  ;;  %988 = vmatpush.xpose.msrb.mxu0 %v921_v14 }
 0x43d   : > { %v1371_v29 = vpop.eup %1370 }
 0x43e   : > { %v918_v46 = vmul.f32 %v1371_v29, %v1968_v11  ;;  %v919_v47 = vmul.f32 %v1371_v29, %v1970_v25  ;;  %v1373_v55 = vpop.eup %1372  ;;  %v950_v11 = vld [vmem:[#allocation3 + $0x18] sm:$0xff] }
 0x43f   : > { %v916_v21 = vmul.f32 %v1373_v55, %v1960_v10  ;;  %v917_v59 = vmul.f32 %v1373_v55, %v1962_v37 }
 0x440   : > { %966 = vmatpush.xpose.msra.mxu3 %v918_v46  ;;  %989 = vmatpush.xpose.msrb.mxu0 %v919_v47 }
 0x444   : > { %967 = vmatpush.xpose.msra.mxu3 %v916_v21  ;;  %990 = vmatpush.xpose.msrb.mxu0 %v917_v59 }
 0x447   : > { %968 = vmatmul.f32.vlgmr.msra.gmra.mxu3 %v948_v63  ;;  %991 = vmatmul.f32.vlgmr.msrb.gmra.mxu0 %v949_v17 }
 0x44f   : > { %971 = vmatmul.f32.gmra.mxu3 %v950_v11  ;;  %994 = vmatmul.f32.gmra.mxu0 %v951_v48 }
 0x4c4   : > { %v992_v25 = vpop.f32.mrf.mxu0 }
 0x4ca   : > { %v969_v10 = vpop.f32.mrf.mxu3 }
 0x4cb   : > { %v970_v37 = vadd.f32 %v969_v10, %v1731_v31 }
 0x4cc   : > { %v995_v2 = vpop.f32.mrf.mxu0 }
 0x4cd   : > { %v993_v19 = vadd.f32 %v992_v25, %v970_v37 }
 0x4cf   : > { %998 = vst [vmem:[%s1693_s14] sm:$0xff] %v993_v19 }
 0x4d2   : > { %v972_v53 = vpop.f32.mrf.mxu3 }
 0x4d3   : > { %v973_v3 = vadd.f32 %v972_v53, %v1729_v30 }
 0x4d5   : > { %v996_v20 = vadd.f32 %v995_v2, %v973_v3 }
 0x4d7   : > { %999 = vst [vmem:[%s1693_s14 + $0x8] sm:$0xff] %v996_v20 }
 0x4d8   : > { %1431 = shalt.err (!%p1428_p1)
}
 0x4d9   : > { %s1532_s17 = smov 128   ;;  %s1533_s14 = smov 256  }
 0x4da   : > { %s1534_s7 = smov 8  }
 0x4db   : > { %1167 = dma.vmem_to_hbm [thread:$0]  (%p1657_p12), %s1015_s12, 256, %s1017_s22, %s1001_s30, %s1532_s17, %s1533_s14, %s1534_s7  }
 0x4dc PF: > { %p1178_p4 = scmp.ge.s32.totalorder %s1526_s11, 2  ;;  %s1031_s10 = sand.u32 1, %s1486_s24  }
 0x4dd   : > { %s1032_s23 = scalar_lea.sflag [#allocation6], %s1031_s10 }
 0x4de   : > { %p1174_p5 = pnand %p1178_p4, %p1670_p2 }
 0x4e0   : > { %p1175_p6 = pneg %p1174_p5 }
 0x4e2   : > { %1481 = dma.done.wait (%p1175_p6), %s1032_s23, 256  }
 0x4e3   : > { %1483 = vsyncadd (%p1175_p6), %s1032_s23, 4294967040  ;;  %s23_s11 = sadd.s32 1, %s1526_s11   ;;  %s2095_s8 = sld [smem:[#allocation16_spill]] }
 0x4e4   : > { %p20_p8 = scmp.ge.s32.totalorder %s23_s11, 6   ;;  %s2096_s12 = sld [smem:[#allocation15_spill]] }
 0x4e5   : > { %s2097_s30 = sld [smem:[#allocation10_spill]]  ;;  %s2101_s24 = smov %s1490_s25 }
 0x4e6   : > { %s2098_s22 = sld [smem:[#allocation11_spill]]  ;;  %s2102_s25 = smov %s1494_s26 }
 0x4e7   : > { %s2099_s9 = sld [smem:[#allocation12_spill]]  ;;  %s2104_s27 = smov %s1502_s28 }
 0x4e8   : > { %s2100_s10 = sld [smem:[#allocation13_spill]]  ;;  %s2105_s28 = smov %s1506_s29 }
 0x4e9   : > { %s2103_s26 = smov %s2095_s8  ;;  %22 = sbr.rel (!%p20_p8) target bundleno = 11 (0xb), region = 98 }
 0x4ea   : > { %s2106_s29 = smov %s2096_s12 }
 0x4ec   : > { %s2107_s8 = smov %s2098_s22 }
 0x4ee   :  { %1038 = vsyncpa [#allocation5], 1 }
 0x4ef   :  { %1040 = vsyncpa [#allocation5 + $0x1], 1 }
 0x4f0   :  { %1041 = vsyncpa [#allocation6], 1 }
 0x4f1   :  { %1043 = vsyncpa [#allocation6 + $0x1], 1 }

</bundles_post_ra>
